<compile_context>
chip_gen: v5e
topology: v5e:2x2
jax: 0.10.0
libtpu: 0.0.40
codegen_flags: <defaults>
</compile_context>

<pallas_src>
import functools

import jax
import jax.numpy as jnp
from jax.experimental import pallas as pl
from jax.experimental.pallas import tpu as pltpu


def _round_up(x, m):
    return (x + m - 1) // m * m


# ----------------------------- kernels ------------------------------------


def _pre_kernel(x_nb_ref, wg1_ref, t1_ref):
    # t1 = x_neighbor @ Wg1  (gcn1 feature transform, hoisted out of the
    # adjacency loop; stored bf16 as RHS of the A_hat matmul).
    t1 = jnp.dot(x_nb_ref[...], wg1_ref[...], preferred_element_type=jnp.float32)
    t1_ref[...] = t1.astype(t1_ref.dtype)


def _gcn1_kernel(adj_ref, t1_ref, bg1_ref, wg2_ref, g1_ref, t2_ref):
    # g1 = A_hat[rows] @ t1 + bg1 ;  t2 = g1 @ Wg2 (gcn2 feature transform)
    f32 = jnp.float32
    g1 = jnp.dot(adj_ref[...], t1_ref[...], preferred_element_type=f32)
    g1 = g1 + bg1_ref[...]
    g1_ref[...] = g1
    t2 = jnp.dot(g1, wg2_ref[...], preferred_element_type=f32)
    t2_ref[...] = t2.astype(t2_ref.dtype)


def _out_kernel(x_self_ref, x_nb_ref, adj_ref, g1_ref, t2_ref,
                w1_ref, b1_ref, w2_ref, b2_ref, bg2_ref, w3_ref, b3_ref,
                out_ref, *, out_channels):
    f32 = jnp.float32

    # g2 = A_hat[rows] @ t2 + bg2
    g2 = jnp.dot(adj_ref[...], t2_ref[...], preferred_element_type=f32)
    g2 = g2 + bg2_ref[...]

    # l1 = linear_out_self(cat([x_self, relu(linear_in_self(x_self))], 1))
    xs = x_self_ref[...]
    h = jnp.dot(xs, w1_ref[...], preferred_element_type=f32) + b1_ref[...]
    h = jnp.maximum(h, 0.0)
    l1 = jnp.dot(jnp.concatenate([xs, h], axis=1), w2_ref[...],
                 preferred_element_type=f32) + b2_ref[...]

    # x2 = linear_out(cat([x_neighbor, g1, g2], 1))  -- single K=Ca+3C matmul
    cat = jnp.concatenate([x_nb_ref[...], g1_ref[...], g2], axis=1)
    x2 = jnp.dot(cat, w3_ref[...], preferred_element_type=f32) + b3_ref[...]

    # lane-dense fused output slab: [l1 | x2 | zero pad] -> full-width store
    tm = out_ref.shape[0]
    pad = out_ref.shape[1] - 2 * out_channels
    pieces = [l1, x2]
    if pad:
        pieces.append(jnp.zeros((tm, pad), f32))
    out_ref[...] = jnp.concatenate(pieces, axis=1)


# ----------------------------- glue / wrapper ------------------------------


def gcn_norm_adj(edge_index, num_nodes):
    """Dense PyG gcn_norm: add self loops + symmetric normalization (f32)."""
    src = edge_index[0]
    tgt = edge_index[1]
    a = jnp.zeros((num_nodes, num_nodes), jnp.float32)
    a = a.at[tgt, src].add(1.0)
    a = a + jnp.eye(num_nodes, dtype=jnp.float32)
    deg = a.sum(axis=1)
    dinv = jnp.where(deg > 0, jax.lax.rsqrt(deg), 0.0)
    return dinv[:, None] * a * dinv[None, :]


def init_params(key, in_self, in_agg, out_channels):
    """Deterministic synthetic parameters. Weights stored as [in, out]."""
    ks = jax.random.split(key, 10)
    s = 0.1

    def w(k, shape):
        return (s * jax.random.normal(k, shape)).astype(jnp.float32)

    c, c2 = out_channels, 2 * out_channels
    return {
        "w1": w(ks[0], (in_self, c2)), "b1": w(ks[1], (1, c2)),
        "w2": w(ks[2], (in_self + c2, c)), "b2": w(ks[3], (1, c)),
        "wg1": w(ks[4], (in_agg, c2)), "bg1": w(ks[5], (1, c2)),
        "wg2": w(ks[6], (c2, c)), "bg2": w(ks[7], (1, c)),
        "w3": w(ks[8], (in_agg + 3 * c, c)), "b3": w(ks[9], (1, c)),
    }


def linear_encoder(x_self, x_neighbor, edge_index, params, *, tm=128):
    assert tm % 128 == 0, "row tile must be a multiple of 128"
    n, cs = x_self.shape
    ca = x_neighbor.shape[1]
    c = params["b2"].shape[-1]
    c2 = 2 * c

    n_pad = _round_up(max(n, tm), tm)
    nt = n_pad // tm

    # Dense A_hat (bf16 to halve HBM/VMEM traffic of the only O(N^2) operand),
    # zero-padded to the tile multiple (padded rows/cols contribute nothing).
    adj = gcn_norm_adj(edge_index, n).astype(jnp.bfloat16)
    adj = jnp.pad(adj, ((0, n_pad - n), (0, n_pad - n)))
    xs = jnp.pad(x_self, ((0, n_pad - n), (0, 0)))
    xn = jnp.pad(x_neighbor, ((0, n_pad - n), (0, 0)))

    cparams = pltpu.CompilerParams(
        dimension_semantics=("parallel",),          # shard rows over v7x 2 TCs
        vmem_limit_bytes=48 * 1024 * 1024,          # headroom below v7x 64 MiB
    )

    def full(shape):                                # resident across the grid
        return pl.BlockSpec(shape, lambda i: (0,) * len(shape))

    def row(width):                                 # per-row-tile block
        return pl.BlockSpec((tm, width), lambda i: (i, 0))

    # phase 1: t1 = x_neighbor @ Wg1   (row-local)
    t1 = pl.pallas_call(
        _pre_kernel,
        grid=(nt,),
        in_specs=[row(ca), full(params["wg1"].shape)],
        out_specs=row(c2),
        out_shape=jax.ShapeDtypeStruct((n_pad, c2), jnp.bfloat16),
        compiler_params=cparams,
    )(xn, params["wg1"])

    # phase 2: g1 = A_hat @ t1 + bg1 ;  t2 = g1 @ Wg2
    g1, t2 = pl.pallas_call(
        _gcn1_kernel,
        grid=(nt,),
        in_specs=[row(n_pad), full((n_pad, c2)),
                  full(params["bg1"].shape), full(params["wg2"].shape)],
        out_specs=(row(c2), row(c)),
        out_shape=(jax.ShapeDtypeStruct((n_pad, c2), jnp.float32),
                   jax.ShapeDtypeStruct((n_pad, c), jnp.bfloat16)),
        compiler_params=cparams,
    )(adj, t1, params["bg1"], params["wg2"])

    # phase 3: g2 = A_hat @ t2 + bg2 ;  l1, x2  -> fused lane-dense slab
    pad_w = _round_up(2 * c, 128)
    out = pl.pallas_call(
        functools.partial(_out_kernel, out_channels=c),
        grid=(nt,),
        in_specs=[row(cs), row(ca), row(n_pad), row(c2), full((n_pad, c)),
                  full(params["w1"].shape), full(params["b1"].shape),
                  full(params["w2"].shape), full(params["b2"].shape),
                  full(params["bg2"].shape),
                  full(params["w3"].shape), full(params["b3"].shape)],
        out_specs=row(pad_w),
        out_shape=jax.ShapeDtypeStruct((n_pad, pad_w), jnp.float32),
        compiler_params=cparams,
    )(xs, xn, adj, g1, t2,
      params["w1"], params["b1"], params["w2"], params["b2"],
      params["bg2"], params["w3"], params["b3"])

    l1 = out[:n, :c]
    x2 = out[:n, c:2 * c]
    return l1, x2


def linear_encoder_ref(x_self, x_neighbor, edge_index, params):
    """Pure-JAX reference mirroring the PyTorch forward (bf16 A_hat path)."""
    f32 = jnp.float32
    adj = gcn_norm_adj(edge_index, x_self.shape[0]).astype(jnp.bfloat16)
    h = jax.nn.relu(x_self @ params["w1"] + params["b1"])
    l1 = jnp.concatenate([x_self, h], axis=1) @ params["w2"] + params["b2"]
    t1 = (x_neighbor @ params["wg1"]).astype(jnp.bfloat16)
    g1 = jnp.dot(adj, t1, preferred_element_type=f32) + params["bg1"]
    t2 = (g1 @ params["wg2"]).astype(jnp.bfloat16)
    g2 = jnp.dot(adj, t2, preferred_element_type=f32) + params["bg2"]
    x2 = (jnp.concatenate([x_neighbor, g1, g2], axis=1) @ params["w3"]
          + params["b3"])
    return l1, x2


if __name__ == "__main__":
    N = 200                      # non-multiple of the 128-row tile (pads to 256)
    in_channels_self = 16
    in_channels_agg = 16
    out_channels = 32

    key = jax.random.PRNGKey(0)
    k_xs, k_xn, k_p = jax.random.split(key, 3)
    x_self = jax.random.normal(k_xs, (N, in_channels_self), jnp.float32)
    x_neighbor = jax.random.normal(k_xn, (N, in_channels_agg), jnp.float32)

    # ring graph, both directions, no self loops (gcn_norm adds them)
    src = jnp.arange(N, dtype=jnp.int32)
    dst = (src + 1) % N
    edge_index = jnp.stack([jnp.concatenate([src, dst]),
                            jnp.concatenate([dst, src])], axis=0)  # [2, 2N]

    params = init_params(k_p, in_channels_self, in_channels_agg, out_channels)

    l1, x2 = jax.block_until_ready(
        linear_encoder(x_self, x_neighbor, edge_index, params, tm=128))

    l1_ref, x2_ref = linear_encoder_ref(x_self, x_neighbor, edge_index, params)
    assert l1.shape == (N, out_channels) and x2.shape == (N, out_channels)
    assert jnp.allclose(l1, l1_ref, atol=1e-2, rtol=1e-2), \
        float(jnp.max(jnp.abs(l1 - l1_ref)))
    assert jnp.allclose(x2, x2_ref, atol=1e-2, rtol=1e-2), \
        float(jnp.max(jnp.abs(x2 - x2_ref)))

    print("KERNEL_OK")
</pallas_src>

<mosaic_0001>
module attributes {stable_mosaic.version = 11 : i64} {
  func.func @_pre_kernel(%arg0: i32, %arg1: memref<128x16xf32, #tpu.memory_space<vmem>>, %arg2: memref<16x64xf32, #tpu.memory_space<vmem>>, %arg3: memref<128x64xbf16, #tpu.memory_space<vmem>>) attributes {dimension_semantics = [#tpu.dimension_semantics<parallel>], iteration_bounds = array<i64: 2>, scalar_prefetch = 0 : i64, scratch_operands = 0 : i64, tpu.core_type = #tpu.core_type<tc>, window_params = [{transform_indices = @transform_0, window_bounds = array<i64: 128, 16>}, {pipeline_mode = #tpu.pipeline_mode<synchronous>, transform_indices = @transform_1, window_bounds = array<i64: 16, 64>}, {transform_indices = @transform_2, window_bounds = array<i64: 128, 64>}]} {
    %c0 = arith.constant 0 : index
    %c0_0 = arith.constant 0 : index
    %0 = vector.load %arg1[%c0, %c0_0] : memref<128x16xf32, #tpu.memory_space<vmem>>, vector<128x16xf32>
    %c0_1 = arith.constant 0 : index
    %c0_2 = arith.constant 0 : index
    %1 = vector.load %arg2[%c0_1, %c0_2] : memref<16x64xf32, #tpu.memory_space<vmem>>, vector<16x64xf32>
    %cst = arith.constant dense<0.000000e+00> : vector<128x64xf32>
    %2 = tpu.matmul %0, %1, %cst {dimension_numbers = #tpu.dot_dimension_numbers<[1], [0], [0], [1], [0, 0, 1, 1], [], []>} : vector<128x16xf32>, vector<16x64xf32>, vector<128x64xf32> -> vector<128x64xf32>
    %3 = arith.truncf %2 : vector<128x64xf32> to vector<128x64xbf16>
    %c0_3 = arith.constant 0 : index
    %c0_4 = arith.constant 0 : index
    %4 = vector.load %arg3[%c0_3, %c0_4] : memref<128x64xbf16, #tpu.memory_space<vmem>>, vector<128x64xbf16>
    tpu.vector_store %arg3[%c0_3, %c0_4], %3 {strides = array<i32>} : memref<128x64xbf16, #tpu.memory_space<vmem>>, vector<128x64xbf16>,
    return
  }
  func.func @transform_0(%arg0: i32) -> (i32, i32) {
    %c0_i32 = arith.constant 0 : i32
    %c0_i32_0 = arith.constant 0 : i32
    return %arg0, %c0_i32 : i32, i32
  }
  func.func @transform_1(%arg0: i32) -> (i32, i32) {
    %c0_i32 = arith.constant 0 : i32
    %c0_i32_0 = arith.constant 0 : i32
    %c0_i32_1 = arith.constant 0 : i32
    return %c0_i32, %c0_i32_0 : i32, i32
  }
  func.func @transform_2(%arg0: i32) -> (i32, i32) {
    %c0_i32 = arith.constant 0 : i32
    %c0_i32_0 = arith.constant 0 : i32
    return %arg0, %c0_i32 : i32, i32
  }
}

</mosaic_0001>

<bundles_post_ra>
// kernel: tpu_custom_call.1
= control target key start
LH: loop header
LB: loop body
LE: loop exit
PB: predicated region body
PF: predicated region fallthrough
CT: control target
= control target key end

     0   :  { %s432_s9 = smov 0   ;;  %s509_s0 = inlined_call_operand.vmem [shape: f32[256,16], index: 0, kind: input, shape index: {}]   ;;  %s510_s1 = inlined_call_operand.vmem [shape: f32[16,64], index: 1, kind: input, shape index: {}]   ;;  %s511_s2 = inlined_call_operand.vmem [shape: bf16[256,64], index: 2, kind: output, shape index: {}]  }
   0x1 LB: > { %s368_s10 = sadd.s32 4294967295, %s415_s9   ;;  %p372_p0 = scmp.ge.s32.totalorder %s415_s9, 1  ;;  %s415_s9 = sphi %s432_s9, %s12_s9  }
   0x2   : > { %p113_p1 = scmp.lt.s32.totalorder %s415_s9, 3 }
   0x4   : > { %p114_p2 = pnand %p372_p0, %p113_p1 }
   0x5   : > { %s373_s15 = sshll.u32 (!%p114_p2), %s368_s10, 4 }
   0x6   : > { %117 = sbr.rel (%p114_p2) target bundleno = 176 (0xb0), region = 28  ;;  %p136_p3 = scmp.lt.s32.totalorder (!%p114_p2), %s373_s15, 31 }
   0xb   : > { %v164_v0 = vld [vmem:[%s510_s1 + $0x8] sm:$0xff]  ;;  %v163_v1 = vld [vmem:[%s510_s1] sm:$0xff]  ;;  %s513_s15 = smov (!%p136_p3, %s373_s15), 31  ;;  %vm165_vm0 = vcmask 130048   ;;  %vm295_vm1 = vcmask 519168  }
   0xc   : > { %396 = vmatpush.msra.mxu2 %v164_v0  ;;  %397 = vmatpush.msra.mxu3 %v164_v0  ;;  %s374_s16 = sshll.u32 %s513_s15, 3  ;;  %s376_s20 = sshll.u32 %s513_s15, 2 }
   0xd   : > { %228 = vmatpush.msra.mxu0 %v164_v0  ;;  %395 = vmatpush.msra.mxu1 %v164_v0  ;;  %s139_s19 = scalar_lea.vmem %s509_s0, %s374_s16  ;;  %s472_s23 = scalar_lea.vmem %s511_s2, %s376_s20 }
   0xe   : > { %399 = vmatpush.msra.mxu2 %v163_v1  ;;  %400 = vmatpush.msra.mxu3 %v163_v1  ;;  %v155_v2 = vld [vmem:[%s139_s19 + $0x40] sm:$0xff]  ;;  %v156_v6 = vld [vmem:[%s139_s19 + $0x48] sm:$0xff]  ;;  %v157_v10 = vld [vmem:[%s139_s19 + $0x50] sm:$0xff] }
   0xf   : > { %229 = vmatpush.msra.mxu0 %v163_v1  ;;  %398 = vmatpush.msra.mxu1 %v163_v1  ;;  %v159_v3 = vld [vmem:[%s139_s19 + $0x60] sm:$0xff]  ;;  %v160_v7 = vld [vmem:[%s139_s19 + $0x68] sm:$0xff]  ;;  %v161_v11 = vld [vmem:[%s139_s19 + $0x70] sm:$0xff] }
  0x10   : > { %v147_v4 = vld [vmem:[%s139_s19] sm:$0xff]  ;;  %385 = vmatmul.msk.f32.vlgmr.msra.gmra.mxu2 %vm165_vm0, %v155_v2  ;;  %389 = vmatmul.msk.f32.vlgmr.msra.gmra.mxu3 %vm165_vm0, %v159_v3  ;;  %v148_v8 = vld [vmem:[%s139_s19 + $0x8] sm:$0xff]  ;;  %v149_v12 = vld [vmem:[%s139_s19 + $0x10] sm:$0xff] }
  0x11   : > { %v151_v5 = vld [vmem:[%s139_s19 + $0x20] sm:$0xff]  ;;  %377 = vmatmul.msk.f32.vlgmr.msra.gmra.mxu0 %vm165_vm0, %v147_v4  ;;  %v152_v9 = vld [vmem:[%s139_s19 + $0x28] sm:$0xff]  ;;  %v153_v13 = vld [vmem:[%s139_s19 + $0x30] sm:$0xff] }
  0x12   : > { %381 = vmatmul.msk.f32.vlgmr.msra.gmra.mxu1 %vm165_vm0, %v151_v5  ;;  %v158_v14 = vld [vmem:[%s139_s19 + $0x58] sm:$0xff] }
  0x13   : > { %v162_v15 = vld [vmem:[%s139_s19 + $0x78] sm:$0xff] }
  0x14   : > { %v150_v16 = vld [vmem:[%s139_s19 + $0x18] sm:$0xff] }
  0x15   : > { %v154_v17 = vld [vmem:[%s139_s19 + $0x38] sm:$0xff] }
  0x18   : > { %386 = vmatmul.msk.f32.gmra.mxu2 %vm165_vm0, %v156_v6  ;;  %390 = vmatmul.msk.f32.gmra.mxu3 %vm165_vm0, %v160_v7 }
  0x19   : > { %378 = vmatmul.msk.f32.gmra.mxu0 %vm165_vm0, %v148_v8 }
  0x1a   : > { %382 = vmatmul.msk.f32.gmra.mxu1 %vm165_vm0, %v152_v9 }
  0x20   : > { %387 = vmatmul.msk.f32.gmra.mxu2 %vm165_vm0, %v157_v10  ;;  %391 = vmatmul.msk.f32.gmra.mxu3 %vm165_vm0, %v161_v11 }
  0x21   : > { %379 = vmatmul.msk.f32.gmra.mxu0 %vm165_vm0, %v149_v12 }
  0x22   : > { %383 = vmatmul.msk.f32.gmra.mxu1 %vm165_vm0, %v153_v13 }
  0x28   : > { %388 = vmatmul.msk.f32.gmra.mxu2 %vm165_vm0, %v158_v14  ;;  %392 = vmatmul.msk.f32.gmra.mxu3 %vm165_vm0, %v162_v15 }
  0x29   : > { %380 = vmatmul.msk.f32.gmra.mxu0 %vm165_vm0, %v150_v16 }
  0x2a   : > { %384 = vmatmul.msk.f32.gmra.mxu1 %vm165_vm0, %v154_v17 }
  0x8e   : > { %v231_v18 = vpop.f32.mrf.mxu0 }
  0x8f   : > { %v243_v19 = vpop.f32.mrf.mxu1  ;;  %v279_v20 = vpack.c.bf16 %v231_v18, %v231_v18 }
  0x90   : > { %v283_v21 = vpack.c.bf16 %v243_v19, %v243_v19 }
  0x91   : > { %296 = vst.msk [vmem:[%s472_s23] sm:$0xf] %vm295_vm1, %v279_v20 }
  0x92   : > { %300 = vst.msk [vmem:[%s472_s23 + $0x10] sm:$0xf] %vm295_vm1, %v283_v21 }
  0x93   : > { %v255_v22 = vpop.f32.mrf.mxu2  ;;  %v267_v23 = vpop.f32.mrf.mxu3 }
  0x94   : > { %v287_v24 = vpack.c.bf16 %v255_v22, %v255_v22  ;;  %v291_v25 = vpack.c.bf16 %v267_v23, %v267_v23 }
  0x96   : > { %304 = vst.msk [vmem:[%s472_s23 + $0x20] sm:$0xf] %vm295_vm1, %v287_v24  ;;  %v234_v26 = vpop.f32.mrf.mxu0 }
  0x97   : > { %v246_v27 = vpop.f32.mrf.mxu1  ;;  %308 = vst.msk [vmem:[%s472_s23 + $0x30] sm:$0xf] %vm295_vm1, %v291_v25  ;;  %v280_v28 = vpack.c.bf16 %v234_v26, %v234_v26 }
  0x98   : > { %v284_v29 = vpack.c.bf16 %v246_v27, %v246_v27 }
  0x99   : > { %297 = vst.msk [vmem:[%s472_s23 + $0x4] sm:$0xf] %vm295_vm1, %v280_v28 }
  0x9a   : > { %301 = vst.msk [vmem:[%s472_s23 + $0x14] sm:$0xf] %vm295_vm1, %v284_v29 }
  0x9b   : > { %v258_v30 = vpop.f32.mrf.mxu2  ;;  %v270_v31 = vpop.f32.mrf.mxu3 }
  0x9c   : > { %v288_v32 = vpack.c.bf16 %v258_v30, %v258_v30  ;;  %v292_v33 = vpack.c.bf16 %v270_v31, %v270_v31 }
  0x9e   : > { %305 = vst.msk [vmem:[%s472_s23 + $0x24] sm:$0xf] %vm295_vm1, %v288_v32  ;;  %v237_v34 = vpop.f32.mrf.mxu0 }
  0x9f   : > { %v249_v35 = vpop.f32.mrf.mxu1  ;;  %309 = vst.msk [vmem:[%s472_s23 + $0x34] sm:$0xf] %vm295_vm1, %v292_v33  ;;  %v281_v36 = vpack.c.bf16 %v237_v34, %v237_v34 }
  0xa0   : > { %v285_v37 = vpack.c.bf16 %v249_v35, %v249_v35 }
  0xa1   : > { %298 = vst.msk [vmem:[%s472_s23 + $0x8] sm:$0xf] %vm295_vm1, %v281_v36 }
  0xa2   : > { %302 = vst.msk [vmem:[%s472_s23 + $0x18] sm:$0xf] %vm295_vm1, %v285_v37 }
  0xa3   : > { %v261_v38 = vpop.f32.mrf.mxu2  ;;  %v273_v39 = vpop.f32.mrf.mxu3 }
  0xa4   : > { %v289_v40 = vpack.c.bf16 %v261_v38, %v261_v38  ;;  %v293_v41 = vpack.c.bf16 %v273_v39, %v273_v39 }
  0xa6   : > { %306 = vst.msk [vmem:[%s472_s23 + $0x28] sm:$0xf] %vm295_vm1, %v289_v40  ;;  %v240_v42 = vpop.f32.mrf.mxu0 }
  0xa7   : > { %v252_v43 = vpop.f32.mrf.mxu1  ;;  %310 = vst.msk [vmem:[%s472_s23 + $0x38] sm:$0xf] %vm295_vm1, %v293_v41  ;;  %v282_v44 = vpack.c.bf16 %v240_v42, %v240_v42 }
  0xa8   : > { %v286_v45 = vpack.c.bf16 %v252_v43, %v252_v43 }
  0xa9   : > { %299 = vst.msk [vmem:[%s472_s23 + $0xc] sm:$0xf] %vm295_vm1, %v282_v44 }
  0xaa   : > { %303 = vst.msk [vmem:[%s472_s23 + $0x1c] sm:$0xf] %vm295_vm1, %v286_v45 }
  0xab   : > { %v264_v46 = vpop.f32.mrf.mxu2  ;;  %v276_v47 = vpop.f32.mrf.mxu3 }
  0xac   : > { %v290_v48 = vpack.c.bf16 %v264_v46, %v264_v46  ;;  %v294_v49 = vpack.c.bf16 %v276_v47, %v276_v47 }
  0xae   : > { %307 = vst.msk [vmem:[%s472_s23 + $0x2c] sm:$0xf] %vm295_vm1, %v290_v48 }
  0xaf   : > { %311 = vst.msk [vmem:[%s472_s23 + $0x3c] sm:$0xf] %vm295_vm1, %v294_v49 }
  0xb0 PF: > { %s12_s9 = sadd.s32 1, %s415_s9  }
  0xb1   : > { %p9_p4 = scmp.ge.s32.totalorder %s12_s9, 4  }
  0xb3   :  { %11 = sbr.rel (!%p9_p4) target bundleno = 1 (0x1), region = 58 }

</bundles_post_ra>
